<compile_context>
chip_gen: v7x
topology: tpu7x:2x2x1
jax: 0.10.0
libtpu: 0.0.40
codegen_flags: <defaults>
</compile_context>

<pallas_src>
import functools

import jax
import jax.numpy as jnp
from jax.experimental import pallas as pl
from jax.experimental.pallas import tpu as pltpu

NEG_SLOPE = 0.2  # nn.LeakyReLU(0.2) used by NLayerLeakyMLP


def _leaky(v):
    return jnp.where(v >= 0.0, v, NEG_SLOPE * v)


def _dleaky(v):
    return jnp.where(v >= 0.0, 1.0, NEG_SLOPE)


def _round_up(x, m):
    return (x + m - 1) // m * m


def _cdiv(a, b):
    return -(-a // b)


# --------------------------- fused forward kernel ----------------------------
def _make_kernel(E, H, D, L, fc_offs, g_offs):
    DH = D * H
    W = (L + 1) * D
    r0, r1, r2 = fc_offs
    o_e, o_yx, o_1, o_2 = g_offs

    def mm(a, b):
        # bf16 MXU matmul, f32 accumulate (same precision as default f32 dot).
        return jnp.dot(a.astype(jnp.bfloat16), b,
                       preferred_element_type=jnp.float32)

    def kernel(slab_ref, fcw_ref, wg_ref, w3_ref, bvec_ref, out_ref):
        slab = slab_ref[...]                        # (tn, E+W) bf16
        emb = slab[:, :E]
        win = slab[:, E:E + W]                      # [yy | xx] lag window

        fb0 = bvec_ref[0:1, :H]
        fb1 = bvec_ref[1:2, :H]
        fb2 = bvec_ref[2:3, :H]
        gb0 = bvec_ref[3:4, :DH]
        gb1 = bvec_ref[4:5, :DH]
        gb2 = bvec_ref[5:6, :DH]
        gw0l = bvec_ref[6:7, :DH]
        gb3 = bvec_ref[7:8, :D]

        # --- shared fc embedding MLP: (tn, E) -> (tn, H) ----------------------
        h = _leaky(mm(emb, fcw_ref[r0:r0 + E, :]) + fb0)
        h = _leaky(mm(h, fcw_ref[r1:r1 + H, :]) + fb1)
        emb_h = mm(h, fcw_ref[r2:r2 + H, :]) + fb2

        # --- layer 0 of all D g_i networks, fused to (tn, D*H) ----------------
        # pre0[:, i*H+k] = emb_h @ W0e_i + [yy|xx] @ [W0y_i | scatter_i] + b0_i
        pre0 = (mm(emb_h, wg_ref[o_e:o_e + H, :])
                + mm(win, wg_ref[o_yx:o_yx + W, :]) + gb0)
        a0 = _leaky(pre0)
        u0 = _dleaky(pre0) * gw0l                   # d a0 / d x_{t,i}

        tn = a0.shape[0]

        def layer(a, u, w):
            # one MXU push shared by the activation and the jvp streams
            z = mm(jnp.concatenate([a, u], axis=0), w)
            return z[:tn], z[tn:]

        # --- layers 1/2 (block-diagonal across latents) ------------------------
        z1a, z1u = layer(a0, u0, wg_ref[o_1:o_1 + DH, :])
        pre1 = z1a + gb1
        a1 = _leaky(pre1)
        u1 = _dleaky(pre1) * z1u

        z2a, z2u = layer(a1, u1, wg_ref[o_2:o_2 + DH, :])
        pre2 = z2a + gb2
        a2 = _leaky(pre2)
        u2 = _dleaky(pre2) * z2u

        # --- output projection: (*, D*H) x (D*H, D) ----------------------------
        z3a, z3u = layer(a2, u2, w3_ref[...])       # (tn, D) each
        res = z3a + gb3                             # residuals
        lad = jnp.sum(jnp.log(jnp.abs(z3u)), axis=-1, keepdims=True)
        out_ref[...] = jnp.concatenate([res, lad], axis=-1)

    return kernel


# ----------------------------- parameters ------------------------------------
def init_params(key, lags, latent_size, embedding_dim, hidden_dim):
    """Torch-style Linear parameters (weights as (out, in))."""
    D, H, E, L = latent_size, hidden_dim, embedding_dim, lags
    gin = H + L * D + 1
    keys = iter(jax.random.split(key, 3 + 4 * D))

    def lin(k, out_f, in_f):
        kw, kb = jax.random.split(k)
        bound = 1.0 / jnp.sqrt(float(in_f))
        w = jax.random.uniform(kw, (out_f, in_f), jnp.float32, -bound, bound)
        b = jax.random.uniform(kb, (out_f,), jnp.float32, -bound, bound)
        return w, b

    # fc = NLayerLeakyMLP(E -> H, num_layers=2): Lin(E,H) LReLU Lin(H,H) LReLU Lin(H,H)
    w0, b0 = lin(next(keys), H, E)
    w1, b1 = lin(next(keys), H, H)
    w2, b2 = lin(next(keys), H, H)
    fc = dict(w0=w0, b0=b0, w1=w1, b1=b1, w2=w2, b2=b2)

    # gs[i] = NLayerLeakyMLP(gin -> 1, num_layers=3):
    #   Lin(gin,H) LReLU Lin(H,H) LReLU Lin(H,H) LReLU Lin(H,1)
    W0, B0, W1, B1, W2, B2, W3, B3 = ([] for _ in range(8))
    for _ in range(D):
        a, b = lin(next(keys), H, gin); W0.append(a); B0.append(b)
        a, b = lin(next(keys), H, H);   W1.append(a); B1.append(b)
        a, b = lin(next(keys), H, H);   W2.append(a); B2.append(b)
        a, b = lin(next(keys), 1, H);   W3.append(a); B3.append(b)
    gs = dict(w0=jnp.stack(W0), b0=jnp.stack(B0),
              w1=jnp.stack(W1), b1=jnp.stack(B1),
              w2=jnp.stack(W2), b2=jnp.stack(B2),
              w3=jnp.stack(W3), b3=jnp.stack(B3))
    return dict(fc=fc, gs=gs)


def pack_params(params, lags):
    """Consolidate all weights into 4 kernel-ready resident slabs."""
    fc, gs = params["fc"], params["gs"]
    H, E = fc["w0"].shape
    D = gs["w0"].shape[0]
    L = lags
    DH = D * H
    W = (L + 1) * D
    wdt = jnp.bfloat16

    # --- fc weight slab (row offsets 16-aligned for bf16 sublane packing) ----
    r0 = 0
    r1 = _round_up(r0 + E, 16)
    r2 = r1 + _round_up(H, 16)
    fcw = jnp.zeros((r2 + _round_up(H, 16), H), jnp.float32)
    fcw = fcw.at[r0:r0 + E].set(fc["w0"].T)
    fcw = fcw.at[r1:r1 + H].set(fc["w1"].T)
    fcw = fcw.at[r2:r2 + H].set(fc["w2"].T)
    fcw = fcw.astype(wdt)

    # --- g weight slab: [ W0e ; W0y|scatter ; W1 blockdiag ; W2 blockdiag ] --
    W0 = gs["w0"]                                   # (D, H, H + L*D + 1)
    W0e = W0[:, :, :H]
    W0y = W0[:, :, H:H + L * D]
    w0l = W0[:, :, -1]                              # (D, H): x_{t,i} column

    gW0e = W0e.transpose(2, 0, 1).reshape(H, DH)
    gW0y = W0y.transpose(2, 0, 1).reshape(L * D, DH)
    eyeD = jnp.eye(D, dtype=jnp.float32)
    gS = (eyeD[:, :, None] * w0l[None, :, :]).reshape(D, DH)   # sparse scatter
    gW0yx = jnp.concatenate([gW0y, gS], axis=0)     # ((L+1)*D, DH)

    gW1 = jax.scipy.linalg.block_diag(*[gs["w1"][i].T for i in range(D)])
    gW2 = jax.scipy.linalg.block_diag(*[gs["w2"][i].T for i in range(D)])

    o_e = 0
    o_yx = _round_up(o_e + H, 16)
    o_1 = _round_up(o_yx + W, 16)
    o_2 = o_1 + _round_up(DH, 16)
    wg = jnp.zeros((o_2 + _round_up(DH, 16), DH), jnp.float32)
    wg = wg.at[o_e:o_e + H].set(gW0e)
    wg = wg.at[o_yx:o_yx + W].set(gW0yx)
    wg = wg.at[o_1:o_1 + DH].set(gW1)
    wg = wg.at[o_2:o_2 + DH].set(gW2)
    wg = wg.astype(wdt)

    # --- output projection (block-stacked) ------------------------------------
    w3 = gs["w3"][:, 0, :]                          # (D, H)
    gW3 = (w3[:, :, None] * eyeD[:, None, :]).reshape(DH, D).astype(wdt)

    # --- bias / scale vector slab (f32, one (8, >=128) tile) ------------------
    BV = _round_up(max(DH, H, D), 128)
    bvec = jnp.zeros((8, BV), jnp.float32)
    bvec = bvec.at[0, :H].set(fc["b0"])
    bvec = bvec.at[1, :H].set(fc["b1"])
    bvec = bvec.at[2, :H].set(fc["b2"])
    bvec = bvec.at[3, :DH].set(gs["b0"].reshape(DH))
    bvec = bvec.at[4, :DH].set(gs["b1"].reshape(DH))
    bvec = bvec.at[5, :DH].set(gs["b2"].reshape(DH))
    bvec = bvec.at[6, :DH].set(w0l.reshape(DH))
    bvec = bvec.at[7, :D].set(gs["b3"].reshape(D))

    return (fcw, wg, gW3, bvec), (r0, r1, r2), (o_e, o_yx, o_1, o_2)


# ------------------------------- forward --------------------------------------
@functools.partial(jax.jit, static_argnums=(3,))
def np_change_transition_prior_forward(x, embeddings, params, lags):
    B, T, D = x.shape
    L = lags
    H = params["fc"]["w0"].shape[0]
    E = embeddings.shape[-1]
    N = B * (T - L)
    W = (L + 1) * D

    (fcw, wg, gW3, bvec), fc_offs, g_offs = pack_params(params, L)

    # Lag window [x_t .. x_{t+L}] per row, built from L+1 static slices (no
    # gather), fused with the embeddings into one lane-dense bf16 input slab.
    win = jnp.concatenate([x[:, l:T - L + l, :] for l in range(L + 1)], axis=-1)
    slab = jnp.concatenate([embeddings.reshape(N, E),
                            win.reshape(N, W)], axis=-1).astype(jnp.bfloat16)

    # Large row tiles (amortize ~0.35us per grid step) but always an even
    # number (>= 2) of grid steps so both v7x TensorCores get balanced work.
    target = 1024
    steps = max(2, 2 * _cdiv(N, 2 * target))
    tile_n = _round_up(_cdiv(N, steps), 16)
    N_pad = steps * tile_n
    if N_pad != N:
        slab = jnp.pad(slab, ((0, N_pad - N), (0, 0)))

    kernel = _make_kernel(E, H, D, L, fc_offs, g_offs)

    out = pl.pallas_call(
        kernel,
        out_shape=jax.ShapeDtypeStruct((N_pad, D + 1), jnp.float32),
        grid=(steps,),
        in_specs=[
            pl.BlockSpec((tile_n, E + W), lambda i: (i, 0)),   # row stream
            pl.BlockSpec(fcw.shape, lambda i: (0, 0)),         # resident weights
            pl.BlockSpec(wg.shape, lambda i: (0, 0)),
            pl.BlockSpec(gW3.shape, lambda i: (0, 0)),
            pl.BlockSpec(bvec.shape, lambda i: (0, 0)),
        ],
        out_specs=pl.BlockSpec((tile_n, D + 1), lambda i: (i, 0)),
        compiler_params=pltpu.CompilerParams(
            dimension_semantics=("parallel",),
            vmem_limit_bytes=32 * 1024 * 1024),
    )(slab, fcw, wg, gW3, bvec)

    residuals = out[:N, :D].reshape(B, T - L, D)
    sum_lad = out[:N, D].reshape(B, T - L).sum(axis=1)
    return residuals, sum_lad


# -------------------------- pure-JAX reference ---------------------------------
def reference_forward(x, embeddings, params, lags):
    B, T, D = x.shape
    L = lags
    N = B * (T - L)
    fc, gs = params["fc"], params["gs"]

    def leaky(v):
        return jnp.where(v >= 0, v, NEG_SLOPE * v)

    emb_h = leaky(embeddings @ fc["w0"].T + fc["b0"])
    emb_h = leaky(emb_h @ fc["w1"].T + fc["b1"])
    emb_h = emb_h @ fc["w2"].T + fc["b2"]

    idx = jnp.arange(T - L)[:, None] + jnp.arange(L + 1)[None, :]
    xw = x[:, idx, :].reshape(N, L + 1, D)
    yy = xw[:, :-1, :].reshape(N, L * D)
    xx = xw[:, -1, :]

    residuals, slad = [], 0.0
    for i in range(D):
        def g_fn(v, i=i):
            h = leaky(v @ gs["w0"][i].T + gs["b0"][i])
            h = leaky(h @ gs["w1"][i].T + gs["b1"][i])
            h = leaky(h @ gs["w2"][i].T + gs["b2"][i])
            return h @ gs["w3"][i].T + gs["b3"][i]          # (1,)

        inputs = jnp.concatenate([emb_h, yy, xx[:, i:i + 1]], axis=-1)
        residuals.append(jax.vmap(g_fn)(inputs))            # (N, 1)
        d_i = jax.vmap(jax.grad(lambda v, i=i: g_fn(v, i)[0]))(inputs)[:, -1]
        slad = slad + jnp.log(jnp.abs(d_i))
    residuals = jnp.concatenate(residuals, axis=-1).reshape(B, T - L, D)
    slad = slad.reshape(B, T - L).sum(axis=1)
    return residuals, slad


if __name__ == "__main__":
    B, T = 2, 8            # batch, sequence length
    D = 4                  # latent_size (= input_dim)
    E = 8                  # embedding_dim
    H = 32                 # hidden_dim  (D*H = 128 -> one full MXU lane tile)
    L = 2                  # lags

    key = jax.random.PRNGKey(0)
    kx, ke, kp = jax.random.split(key, 3)
    x = jax.random.normal(kx, (B, T, D), jnp.float32)
    N = B * (T - L)
    embeddings = jax.random.normal(ke, (N, E), jnp.float32)
    params = init_params(kp, L, D, E, H)

    residuals, slad = np_change_transition_prior_forward(x, embeddings, params, L)
    jax.block_until_ready((residuals, slad))

    assert residuals.shape == (B, T - L, D)
    assert slad.shape == (B,)

    ref_res, ref_slad = reference_forward(x, embeddings, params, L)
    assert jnp.allclose(residuals, ref_res, atol=5e-2, rtol=5e-2), (
        float(jnp.max(jnp.abs(residuals - ref_res))))
    assert jnp.allclose(slad, ref_slad, atol=5e-1, rtol=2e-2), (
        float(jnp.max(jnp.abs(slad - ref_slad))))

    print("KERNEL_OK")
</pallas_src>

<mosaic_0001>
module attributes {stable_mosaic.version = 11 : i64} {
  func.func @kernel(%arg0: i32, %arg1: memref<16x20xbf16, #tpu.memory_space<vmem>>, %arg2: memref<80x32xbf16, #tpu.memory_space<vmem>>, %arg3: memref<304x128xbf16, #tpu.memory_space<vmem>>, %arg4: memref<128x4xbf16, #tpu.memory_space<vmem>>, %arg5: memref<8x128xf32, #tpu.memory_space<vmem>>, %arg6: memref<16x5xf32, #tpu.memory_space<vmem>>) attributes {dimension_semantics = [#tpu.dimension_semantics<parallel>], iteration_bounds = array<i64: 2>, scalar_prefetch = 0 : i64, scratch_operands = 0 : i64, tpu.core_type = #tpu.core_type<tc>, window_params = [{transform_indices = @transform_0, window_bounds = array<i64: 16, 20>}, {pipeline_mode = #tpu.pipeline_mode<synchronous>, transform_indices = @transform_1, window_bounds = array<i64: 80, 32>}, {pipeline_mode = #tpu.pipeline_mode<synchronous>, transform_indices = @transform_2, window_bounds = array<i64: 304, 128>}, {pipeline_mode = #tpu.pipeline_mode<synchronous>, transform_indices = @transform_3, window_bounds = array<i64: 128, 4>}, {pipeline_mode = #tpu.pipeline_mode<synchronous>, transform_indices = @transform_4, window_bounds = array<i64: 8, 128>}, {transform_indices = @transform_5, window_bounds = array<i64: 16, 5>}]} {
    %c0 = arith.constant 0 : index
    %c0_0 = arith.constant 0 : index
    %0 = vector.load %arg1[%c0, %c0_0] : memref<16x20xbf16, #tpu.memory_space<vmem>>, vector<16x20xbf16>
    %1 = vector.extract_strided_slice %0 {offsets = [0, 0], sizes = [16, 8], strides = [1, 1]} : vector<16x20xbf16> to vector<16x8xbf16>
    %2 = vector.extract_strided_slice %0 {offsets = [0, 8], sizes = [16, 12], strides = [1, 1]} : vector<16x20xbf16> to vector<16x12xbf16>
    %c0_1 = arith.constant 0 : index
    %c0_2 = arith.constant 0 : index
    %3 = vector.load %arg5[%c0_1, %c0_2] : memref<8x128xf32, #tpu.memory_space<vmem>>, vector<1x32xf32>
    %c1 = arith.constant 1 : index
    %c0_3 = arith.constant 0 : index
    %4 = vector.load %arg5[%c1, %c0_3] : memref<8x128xf32, #tpu.memory_space<vmem>>, vector<1x32xf32>
    %c2 = arith.constant 2 : index
    %c0_4 = arith.constant 0 : index
    %5 = vector.load %arg5[%c2, %c0_4] : memref<8x128xf32, #tpu.memory_space<vmem>>, vector<1x32xf32>
    %c3 = arith.constant 3 : index
    %c0_5 = arith.constant 0 : index
    %6 = vector.load %arg5[%c3, %c0_5] : memref<8x128xf32, #tpu.memory_space<vmem>>, vector<1x128xf32>
    %c4 = arith.constant 4 : index
    %c0_6 = arith.constant 0 : index
    %7 = vector.load %arg5[%c4, %c0_6] : memref<8x128xf32, #tpu.memory_space<vmem>>, vector<1x128xf32>
    %c5 = arith.constant 5 : index
    %c0_7 = arith.constant 0 : index
    %8 = vector.load %arg5[%c5, %c0_7] : memref<8x128xf32, #tpu.memory_space<vmem>>, vector<1x128xf32>
    %c6 = arith.constant 6 : index
    %c0_8 = arith.constant 0 : index
    %9 = vector.load %arg5[%c6, %c0_8] : memref<8x128xf32, #tpu.memory_space<vmem>>, vector<1x128xf32>
    %c7 = arith.constant 7 : index
    %c0_9 = arith.constant 0 : index
    %10 = vector.load %arg5[%c7, %c0_9] : memref<8x128xf32, #tpu.memory_space<vmem>>, vector<1x4xf32>
    %c0_10 = arith.constant 0 : index
    %c0_11 = arith.constant 0 : index
    %11 = vector.load %arg2[%c0_10, %c0_11] : memref<80x32xbf16, #tpu.memory_space<vmem>>, vector<8x32xbf16>
    %cst = arith.constant dense<0.000000e+00> : vector<16x32xf32>
    %12 = tpu.matmul %1, %11, %cst {dimension_numbers = #tpu.dot_dimension_numbers<[1], [0], [0], [1], [0, 0, 1, 1], [], []>} : vector<16x8xbf16>, vector<8x32xbf16>, vector<16x32xf32> -> vector<16x32xf32>
    %13 = vector.broadcast %3 : vector<1x32xf32> to vector<16x32xf32>
    %14 = arith.addf %12, %13 : vector<16x32xf32>
    %cst_12 = arith.constant 0.000000e+00 : f32
    %15 = vector.broadcast %cst_12 : f32 to vector<16x32xf32>
    %16 = arith.cmpf oge, %14, %15 : vector<16x32xf32>
    %cst_13 = arith.constant 2.000000e-01 : f32
    %17 = vector.broadcast %cst_13 : f32 to vector<16x32xf32>
    %18 = arith.mulf %17, %14 : vector<16x32xf32>
    %19 = arith.select %16, %14, %18 : vector<16x32xi1>, vector<16x32xf32>
    %c16 = arith.constant 16 : index
    %c0_14 = arith.constant 0 : index
    %20 = vector.load %arg2[%c16, %c0_14] : memref<80x32xbf16, #tpu.memory_space<vmem>>, vector<32x32xbf16>
    %21 = arith.truncf %19 : vector<16x32xf32> to vector<16x32xbf16>
    %cst_15 = arith.constant dense<0.000000e+00> : vector<16x32xf32>
    %22 = tpu.matmul %21, %20, %cst_15 {dimension_numbers = #tpu.dot_dimension_numbers<[1], [0], [0], [1], [0, 0, 1, 1], [], []>} : vector<16x32xbf16>, vector<32x32xbf16>, vector<16x32xf32> -> vector<16x32xf32>
    %23 = vector.broadcast %4 : vector<1x32xf32> to vector<16x32xf32>
    %24 = arith.addf %22, %23 : vector<16x32xf32>
    %cst_16 = arith.constant 0.000000e+00 : f32
    %25 = vector.broadcast %cst_16 : f32 to vector<16x32xf32>
    %26 = arith.cmpf oge, %24, %25 : vector<16x32xf32>
    %cst_17 = arith.constant 2.000000e-01 : f32
    %27 = vector.broadcast %cst_17 : f32 to vector<16x32xf32>
    %28 = arith.mulf %27, %24 : vector<16x32xf32>
    %29 = arith.select %26, %24, %28 : vector<16x32xi1>, vector<16x32xf32>
    %c48 = arith.constant 48 : index
    %c0_18 = arith.constant 0 : index
    %30 = vector.load %arg2[%c48, %c0_18] : memref<80x32xbf16, #tpu.memory_space<vmem>>, vector<32x32xbf16>
    %31 = arith.truncf %29 : vector<16x32xf32> to vector<16x32xbf16>
    %cst_19 = arith.constant dense<0.000000e+00> : vector<16x32xf32>
    %32 = tpu.matmul %31, %30, %cst_19 {dimension_numbers = #tpu.dot_dimension_numbers<[1], [0], [0], [1], [0, 0, 1, 1], [], []>} : vector<16x32xbf16>, vector<32x32xbf16>, vector<16x32xf32> -> vector<16x32xf32>
    %33 = vector.broadcast %5 : vector<1x32xf32> to vector<16x32xf32>
    %34 = arith.addf %32, %33 : vector<16x32xf32>
    %c0_20 = arith.constant 0 : index
    %c0_21 = arith.constant 0 : index
    %35 = vector.load %arg3[%c0_20, %c0_21] : memref<304x128xbf16, #tpu.memory_space<vmem>>, vector<32x128xbf16>
    %36 = arith.truncf %34 : vector<16x32xf32> to vector<16x32xbf16>
    %cst_22 = arith.constant dense<0.000000e+00> : vector<16x128xf32>
    %37 = tpu.matmul %36, %35, %cst_22 {dimension_numbers = #tpu.dot_dimension_numbers<[1], [0], [0], [1], [0, 0, 1, 1], [], []>} : vector<16x32xbf16>, vector<32x128xbf16>, vector<16x128xf32> -> vector<16x128xf32>
    %c32 = arith.constant 32 : index
    %c0_23 = arith.constant 0 : index
    %38 = vector.load %arg3[%c32, %c0_23] : memref<304x128xbf16, #tpu.memory_space<vmem>>, vector<12x128xbf16>
    %cst_24 = arith.constant dense<0.000000e+00> : vector<16x128xf32>
    %39 = tpu.matmul %2, %38, %cst_24 {dimension_numbers = #tpu.dot_dimension_numbers<[1], [0], [0], [1], [0, 0, 1, 1], [], []>} : vector<16x12xbf16>, vector<12x128xbf16>, vector<16x128xf32> -> vector<16x128xf32>
    %40 = arith.addf %37, %39 : vector<16x128xf32>
    %41 = vector.broadcast %6 : vector<1x128xf32> to vector<16x128xf32>
    %42 = arith.addf %40, %41 : vector<16x128xf32>
    %cst_25 = arith.constant 0.000000e+00 : f32
    %43 = vector.broadcast %cst_25 : f32 to vector<16x128xf32>
    %44 = arith.cmpf oge, %42, %43 : vector<16x128xf32>
    %cst_26 = arith.constant 2.000000e-01 : f32
    %45 = vector.broadcast %cst_26 : f32 to vector<16x128xf32>
    %46 = arith.mulf %45, %42 : vector<16x128xf32>
    %47 = arith.select %44, %42, %46 : vector<16x128xi1>, vector<16x128xf32>
    %cst_27 = arith.constant 0.000000e+00 : f32
    %48 = vector.broadcast %cst_27 : f32 to vector<16x128xf32>
    %49 = arith.cmpf oge, %42, %48 : vector<16x128xf32>
    %cst_28 = arith.constant 1.000000e+00 : f32
    %cst_29 = arith.constant 2.000000e-01 : f32
    %50 = vector.broadcast %cst_28 : f32 to vector<16x128xf32>
    %51 = vector.broadcast %cst_29 : f32 to vector<16x128xf32>
    %52 = arith.select %49, %50, %51 : vector<16x128xi1>, vector<16x128xf32>
    %53 = vector.broadcast %9 : vector<1x128xf32> to vector<16x128xf32>
    %54 = arith.mulf %52, %53 : vector<16x128xf32>
    %c48_30 = arith.constant 48 : index
    %c0_31 = arith.constant 0 : index
    %55 = vector.load %arg3[%c48_30, %c0_31] : memref<304x128xbf16, #tpu.memory_space<vmem>>, vector<128x128xbf16>
    %56 = tpu.concatenate %47, %54 in 0 : vector<16x128xf32>, vector<16x128xf32> -> vector<32x128xf32>
    %57 = arith.truncf %56 : vector<32x128xf32> to vector<32x128xbf16>
    %cst_32 = arith.constant dense<0.000000e+00> : vector<32x128xf32>
    %58 = tpu.matmul %57, %55, %cst_32 {dimension_numbers = #tpu.dot_dimension_numbers<[1], [0], [0], [1], [0, 0, 1, 1], [], []>} : vector<32x128xbf16>, vector<128x128xbf16>, vector<32x128xf32> -> vector<32x128xf32>
    %59 = vector.extract_strided_slice %58 {offsets = [0, 0], sizes = [16, 128], strides = [1, 1]} : vector<32x128xf32> to vector<16x128xf32>
    %60 = vector.extract_strided_slice %58 {offsets = [16, 0], sizes = [16, 128], strides = [1, 1]} : vector<32x128xf32> to vector<16x128xf32>
    %61 = vector.broadcast %7 : vector<1x128xf32> to vector<16x128xf32>
    %62 = arith.addf %59, %61 : vector<16x128xf32>
    %cst_33 = arith.constant 0.000000e+00 : f32
    %63 = vector.broadcast %cst_33 : f32 to vector<16x128xf32>
    %64 = arith.cmpf oge, %62, %63 : vector<16x128xf32>
    %cst_34 = arith.constant 2.000000e-01 : f32
    %65 = vector.broadcast %cst_34 : f32 to vector<16x128xf32>
    %66 = arith.mulf %65, %62 : vector<16x128xf32>
    %67 = arith.select %64, %62, %66 : vector<16x128xi1>, vector<16x128xf32>
    %cst_35 = arith.constant 0.000000e+00 : f32
    %68 = vector.broadcast %cst_35 : f32 to vector<16x128xf32>
    %69 = arith.cmpf oge, %62, %68 : vector<16x128xf32>
    %cst_36 = arith.constant 1.000000e+00 : f32
    %cst_37 = arith.constant 2.000000e-01 : f32
    %70 = vector.broadcast %cst_36 : f32 to vector<16x128xf32>
    %71 = vector.broadcast %cst_37 : f32 to vector<16x128xf32>
    %72 = arith.select %69, %70, %71 : vector<16x128xi1>, vector<16x128xf32>
    %73 = arith.mulf %72, %60 : vector<16x128xf32>
    %c176 = arith.constant 176 : index
    %c0_38 = arith.constant 0 : index
    %74 = vector.load %arg3[%c176, %c0_38] : memref<304x128xbf16, #tpu.memory_space<vmem>>, vector<128x128xbf16>
    %75 = tpu.concatenate %67, %73 in 0 : vector<16x128xf32>, vector<16x128xf32> -> vector<32x128xf32>
    %76 = arith.truncf %75 : vector<32x128xf32> to vector<32x128xbf16>
    %cst_39 = arith.constant dense<0.000000e+00> : vector<32x128xf32>
    %77 = tpu.matmul %76, %74, %cst_39 {dimension_numbers = #tpu.dot_dimension_numbers<[1], [0], [0], [1], [0, 0, 1, 1], [], []>} : vector<32x128xbf16>, vector<128x128xbf16>, vector<32x128xf32> -> vector<32x128xf32>
    %78 = vector.extract_strided_slice %77 {offsets = [0, 0], sizes = [16, 128], strides = [1, 1]} : vector<32x128xf32> to vector<16x128xf32>
    %79 = vector.extract_strided_slice %77 {offsets = [16, 0], sizes = [16, 128], strides = [1, 1]} : vector<32x128xf32> to vector<16x128xf32>
    %80 = vector.broadcast %8 : vector<1x128xf32> to vector<16x128xf32>
    %81 = arith.addf %78, %80 : vector<16x128xf32>
    %cst_40 = arith.constant 0.000000e+00 : f32
    %82 = vector.broadcast %cst_40 : f32 to vector<16x128xf32>
    %83 = arith.cmpf oge, %81, %82 : vector<16x128xf32>
    %cst_41 = arith.constant 2.000000e-01 : f32
    %84 = vector.broadcast %cst_41 : f32 to vector<16x128xf32>
    %85 = arith.mulf %84, %81 : vector<16x128xf32>
    %86 = arith.select %83, %81, %85 : vector<16x128xi1>, vector<16x128xf32>
    %cst_42 = arith.constant 0.000000e+00 : f32
    %87 = vector.broadcast %cst_42 : f32 to vector<16x128xf32>
    %88 = arith.cmpf oge, %81, %87 : vector<16x128xf32>
    %cst_43 = arith.constant 1.000000e+00 : f32
    %cst_44 = arith.constant 2.000000e-01 : f32
    %89 = vector.broadcast %cst_43 : f32 to vector<16x128xf32>
    %90 = vector.broadcast %cst_44 : f32 to vector<16x128xf32>
    %91 = arith.select %88, %89, %90 : vector<16x128xi1>, vector<16x128xf32>
    %92 = arith.mulf %91, %79 : vector<16x128xf32>
    %c0_45 = arith.constant 0 : index
    %c0_46 = arith.constant 0 : index
    %93 = vector.load %arg4[%c0_45, %c0_46] : memref<128x4xbf16, #tpu.memory_space<vmem>>, vector<128x4xbf16>
    %94 = tpu.concatenate %86, %92 in 0 : vector<16x128xf32>, vector<16x128xf32> -> vector<32x128xf32>
    %95 = arith.truncf %94 : vector<32x128xf32> to vector<32x128xbf16>
    %cst_47 = arith.constant dense<0.000000e+00> : vector<32x4xf32>
    %96 = tpu.matmul %95, %93, %cst_47 {dimension_numbers = #tpu.dot_dimension_numbers<[1], [0], [0], [1], [0, 0, 1, 1], [], []>} : vector<32x128xbf16>, vector<128x4xbf16>, vector<32x4xf32> -> vector<32x4xf32>
    %97 = vector.extract_strided_slice %96 {offsets = [0, 0], sizes = [16, 4], strides = [1, 1]} : vector<32x4xf32> to vector<16x4xf32>
    %98 = vector.extract_strided_slice %96 {offsets = [16, 0], sizes = [16, 4], strides = [1, 1]} : vector<32x4xf32> to vector<16x4xf32>
    %99 = vector.broadcast %10 : vector<1x4xf32> to vector<16x4xf32>
    %100 = arith.addf %97, %99 : vector<16x4xf32>
    %101 = math.absf %98 : vector<16x4xf32>
    %102 = math.log %101 : vector<16x4xf32>
    %cst_48 = arith.constant dense<0.000000e+00> : vector<16xf32>
    %103 = vector.multi_reduction <add>, %102, %cst_48 [1] : vector<16x4xf32> to vector<16xf32>
    %104 = vector.shape_cast %103 : vector<16xf32> to vector<16x1xf32>
    %105 = tpu.concatenate %100, %104 in 1 : vector<16x4xf32>, vector<16x1xf32> -> vector<16x5xf32>
    %c0_49 = arith.constant 0 : index
    %c0_50 = arith.constant 0 : index
    %106 = vector.load %arg6[%c0_49, %c0_50] : memref<16x5xf32, #tpu.memory_space<vmem>>, vector<16x5xf32>
    tpu.vector_store %arg6[%c0_49, %c0_50], %105 {strides = array<i32>} : memref<16x5xf32, #tpu.memory_space<vmem>>, vector<16x5xf32>,
    return
  }
  func.func @transform_0(%arg0: i32) -> (i32, i32) {
    %c0_i32 = arith.constant 0 : i32
    %c0_i32_0 = arith.constant 0 : i32
    return %arg0, %c0_i32 : i32, i32
  }
  func.func @transform_1(%arg0: i32) -> (i32, i32) {
    %c0_i32 = arith.constant 0 : i32
    %c0_i32_0 = arith.constant 0 : i32
    %c0_i32_1 = arith.constant 0 : i32
    return %c0_i32, %c0_i32_0 : i32, i32
  }
  func.func @transform_2(%arg0: i32) -> (i32, i32) {
    %c0_i32 = arith.constant 0 : i32
    %c0_i32_0 = arith.constant 0 : i32
    %c0_i32_1 = arith.constant 0 : i32
    return %c0_i32, %c0_i32_0 : i32, i32
  }
  func.func @transform_3(%arg0: i32) -> (i32, i32) {
    %c0_i32 = arith.constant 0 : i32
    %c0_i32_0 = arith.constant 0 : i32
    %c0_i32_1 = arith.constant 0 : i32
    return %c0_i32, %c0_i32_0 : i32, i32
  }
  func.func @transform_4(%arg0: i32) -> (i32, i32) {
    %c0_i32 = arith.constant 0 : i32
    %c0_i32_0 = arith.constant 0 : i32
    %c0_i32_1 = arith.constant 0 : i32
    return %c0_i32, %c0_i32_0 : i32, i32
  }
  func.func @transform_5(%arg0: i32) -> (i32, i32) {
    %c0_i32 = arith.constant 0 : i32
    %c0_i32_0 = arith.constant 0 : i32
    return %arg0, %c0_i32 : i32, i32
  }
}

</mosaic_0001>

<bundles_post_ra>
// kernel: squeeze.23
= control target key start
LH: loop header
LB: loop body
LE: loop exit
PB: predicated region body
PF: predicated region fallthrough
CT: control target
= control target key end

     0   :  { %vm7_vm0 = vcmask 48128   ;;  %s39_s0 = inlined_call_operand.vmem [shape: f32[12], index: 0, kind: input, shape index: {}]   ;;  %s40_s1 = inlined_call_operand.vmem [shape: f32[2,6], index: 1, kind: output, shape index: {}]  }
   0x1   :  { %v4_v0 = vld [vmem:[%s39_s0] sm:$0x1]  ;;  %s22_s0 = smov 122  }
   0x2   :  { %5 = vst [vmem:[#allocation1] sm:$0x1] %v4_v0 }
   0x9   :  { %v9_v1 = vld [vmem:[#allocation1] sm:$0x1]  }
   0xa   :  { %v6_v2 = vld [vmem:[#allocation1] sm:$0x1]   ;;  %10 = vrot.lane.b32.xlu0 %v9_v1, %s22_s0 }
   0xb   :  { %8 = vst.msk [vmem:[#allocation0] sm:$0x1] %vm7_vm0, %v6_v2  }
  0x7c   :  { %v11_v3 = vpop.permute.xlu0 %10  }
  0x7d   :  { %14 = vst.msk [vmem:[#allocation0 + $0x1] sm:$0x1] %vm7_vm0, %v11_v3  }
  0x84   :  { %v18_v4 = vld [vmem:[#allocation0] sm:$0x3] }
  0x85   :  { %20 = vst [vmem:[%s40_s1] sm:$0x3] %v18_v4 }

// kernel: np_change_transition_prior_forward.1
= control target key start
LH: loop header
LB: loop body
LE: loop exit
PB: predicated region body
PF: predicated region fallthrough
CT: control target
= control target key end

     0   :  { %s1322_s18 = smov 0   ;;  %s1494_s0 = inlined_call_operand.vmem [shape: bf16[32,20], index: 0, kind: input, shape index: {}]   ;;  %s1495_s1 = inlined_call_operand.vmem [shape: bf16[80,32], index: 1, kind: input, shape index: {}]   ;;  %s1496_s2 = inlined_call_operand.vmem [shape: bf16[304,128], index: 2, kind: input, shape index: {}]   ;;  %s1497_s3 = inlined_call_operand.vmem [shape: bf16[128,4], index: 3, kind: input, shape index: {}]   ;;  %s1498_s4 = inlined_call_operand.vmem [shape: f32[8,128], index: 4, kind: input, shape index: {}]   ;;  %s1499_s5 = inlined_call_operand.vmem [shape: f32[32,5], index: 5, kind: output, shape index: {}]  }
   0x1 LB: > { %s1037_s19 = sadd.s32 4294967295, %s1286_s18   ;;  %p1041_p0 = scmp.ge.s32.totalorder %s1286_s18, 1  ;;  %s1286_s18 = sphi %s1322_s18, %s15_s18  }
   0x2   : > { %p188_p1 = scmp.lt.s32.totalorder %s1286_s18, 3 }
   0x4   : > { %p189_p2 = pnand %p1041_p0, %p188_p1 }
   0x5   : > { %v239_v0 = vld [vmem:[%s1495_s1] sm:$0xf] (!%p189_p2)  ;;  %vm253_vm0 = vcmask (!%p189_p2), 1043456   ;;  %s1042_s22 = sshll.u32 (!%p189_p2), %s1037_s19, 1  ;;  %v1288_v1 = vmov (!%p189_p2), 0.0   ;;  %vm1289_vm1 = vmmov (!%p189_p2), 0  }
   0x6   : > { %192 = sbr.rel (%p189_p2) target bundleno = 1721 (0x6b9), region = 40  ;;  %1136 = vmatprep.subr.bf16.mxu0 (!%p189_p2), %v1288_v1  ;;  %v255_v2 = vsel (!%p189_p2), %vm253_vm0, %v239_v0, 0  ;;  %1138 = vmatprep.mubr.msk.bf16.mxu0 (!%p189_p2), %vm1289_vm1, %v1288_v1  ;;  %p217_p3 = scmp.lt.s32.totalorder (!%p189_p2), %s1042_s22, 3  ;;  %vm249_vm2 = vcmask (!%p189_p2), 64512   ;;  %v1245_v4 = vld [vmem:[%s1495_s1 + $0x8] sm:$0xff] (!%p189_p2)   ;;  %v1246_v5 = vld [vmem:[%s1495_s1 + $0x10] sm:$0xff] (!%p189_p2)  }
   0x7   : > { %1137 = vmatpush3.bf16.msra.mxu0 (!%p189_p2), %v255_v2  ;;  %1158 = vmatprep.subr.bf16.mxu1 (!%p189_p2), %v1288_v1  ;;  %v1046_v6 = vld [vmem:[%s1498_s4] ss:$0 sm:$0xff] (!%p189_p2)  ;;  %vm325_vm5 = vcmask (!%p189_p2), 261120   ;;  %v1247_v18 = vld [vmem:[%s1495_s1 + $0x18] sm:$0xff] (!%p189_p2)   ;;  %s1290_s12 = smov (!%p189_p2), 120   ;;  %vm459_vm8 = vcmask (!%p189_p2), 1045504  }
   0x8   : > { %1142 = vmatprep.subr.bf16.mxu0 (!%p189_p2), %v1288_v1  ;;  %1160 = vmatprep.mubr.msk.bf16.mxu1 (!%p189_p2), %vm1289_vm1, %v1288_v1  ;;  %v1248_v19 = vld [vmem:[%s1495_s1 + $0x20] sm:$0xff] (!%p189_p2)   ;;  %v1250_v33 = vld [vmem:[%s1496_s2 + $0x10] sm:$0x3f] (!%p189_p2)   ;;  %v1251_v35 = vld [vmem:[%s1496_s2 + $0x8] sm:$0xff] (!%p189_p2)   ;;  %vm455_vm9 = vcmask (!%p189_p2), 97280   ;;  %vm969_vm0 = vcmask (!%p189_p2), 31744  }
   0x9   : > { %v1049_v20 = vld [vmem:[%s1498_s4 + $0x1] ss:$0 sm:$0xff] (!%p189_p2)  ;;  %v461_v34 = vsel (!%p189_p2), %vm459_vm8, %v1250_v33, 0  ;;  %v1252_v37 = vld [vmem:[%s1496_s2 + $0x18] sm:$0xff] (!%p189_p2)   ;;  %v1254_v39 = vld [vmem:[%s1496_s2 + $0x28] sm:$0xff] (!%p189_p2)  }
   0xa   : > { %v1249_v31 = vld [vmem:[%s1496_s2] sm:$0xff] (!%p189_p2)   ;;  %1159 = vmatpush3.bf16.msra.mxu1 (!%p189_p2), %v461_v34  ;;  %v1255_v40 = vld [vmem:[%s1496_s2 + $0x30] sm:$0xff] (!%p189_p2)   ;;  %v1256_v41 = vld [vmem:[%s1496_s2 + $0x38] sm:$0xff] (!%p189_p2)  }
   0xb   : > { %v1253_v38 = vld [vmem:[%s1496_s2 + $0x20] sm:$0xff] (!%p189_p2)   ;;  %1172 = vmatprep.subr.bf16.mxu1 (!%p189_p2), %v1252_v37  ;;  %v1258_v55 = vld [vmem:[%s1496_s2 + $0x48] sm:$0xff] (!%p189_p2)   ;;  %v1259_v56 = vld [vmem:[%s1496_s2 + $0x50] sm:$0xff] (!%p189_p2)  }
   0xc   : > { %v1053_v42 = vld [vmem:[%s1498_s4 + $0x2] ss:$0 sm:$0xff] (!%p189_p2)  ;;  %v1260_v57 = vld [vmem:[%s1496_s2 + $0x58] sm:$0xff] (!%p189_p2)   ;;  %v1262_v59 = vld [vmem:[%s1496_s2 + $0x68] sm:$0xff] (!%p189_p2)  }
   0xd   : > { %s1501_s22 = smov (!%p217_p3, %s1042_s22), 3  ;;  %v1257_v53 = vld [vmem:[%s1496_s2 + $0x40] sm:$0xff]   ;;  %v1263_v60 = vld [vmem:[%s1496_s2 + $0x70] sm:$0xff]   ;;  %v1264_v61 = vld [vmem:[%s1496_s2 + $0x78] sm:$0xff]  }
   0xe   : > { %s1043_s23 = sshll.u32 %s1501_s22, 2  ;;  %v1261_v58 = vld [vmem:[%s1496_s2 + $0x60] sm:$0xff]  }
   0xf   : > { %s220_s26 = scalar_lea.vmem %s1494_s0, %s1043_s23  ;;  %v1062_v62 = vld [vmem:[%s1498_s4 + $0x3] ss:$0 sm:$0xff] }
  0x10   : > { %v1244_v3 = vld [vmem:[%s220_s26] sm:$0xff]  }
  0x11   : > { %1139 = vmatmul.mubr.msk.bf16.vlgmr.msra.gmra.mrb[0].mxu0 %vm249_vm2, %v1244_v3  ;;  %448 = vrot.lane.b32.xlu0 %v1244_v3, %s1290_s12  ;;  %s1045_s12 = sshll.u32 %s1501_s22, 3 }
  0x12   : > { %1146 = vmatprep.mubr.msk.bf16.mxu0 %vm1289_vm1, %v1288_v1  ;;  %1143 = vmatpush3.bf16.msra.mxu0 %v1245_v4  ;;  %s226_s15 = scalar_lea.vmem %s1499_s5, %s1045_s12 }
  0x13   : > { %1144 = vmatprep.subr.bf16.mxu0 %v1288_v1 }
  0x16   : > { %1145 = vmatpush3.bf16.msra.mxu0 %v1246_v5 }
  0x17   : > { %1150 = vmatprep.subr.bf16.mxu0 %v1288_v1 }
  0x83   : > { %v449_v36 = vpop.permute.xlu0 %448 }
  0x84   : > { %1161 = vmatmul.mubr.msk.bf16.vlgmr.msra.gmra.mrb[0].mxu1 %vm455_vm9, %v449_v36 }
  0x85   : > { %1173 = vmatpush3.bf16.msra.mxu1 %v1252_v37 }
  0x86   : > { %1174 = vmatprep.subr.bf16.mxu1 %v1253_v38 }
  0x89   : > { %1175 = vmatpush3.bf16.msra.mxu1 %v1253_v38 }
  0x8a   : > { %1176 = vmatprep.subr.bf16.mxu1 %v1254_v39 }
  0x8d   : > { %1177 = vmatpush3.bf16.msra.mxu1 %v1254_v39 }
  0x8e   : > { %1178 = vmatprep.subr.bf16.mxu1 %v1255_v40 }
  0x91   : > { %1179 = vmatpush3.bf16.msra.mxu1 %v1255_v40 }
  0x92   : > { %1180 = vmatprep.subr.bf16.mxu1 %v1256_v41 }
  0x95   : > { %1181 = vmatpush3.bf16.msra.mxu1 %v1256_v41 }
  0x96   : > { %1182 = vmatprep.subr.bf16.mxu1 %v1257_v53 }
  0x99   : > { %1183 = vmatpush3.bf16.msra.mxu1 %v1257_v53 }
  0x9a   : > { %1184 = vmatprep.subr.bf16.mxu1 %v1258_v55 }
  0x9d   : > { %1185 = vmatpush3.bf16.msra.mxu1 %v1258_v55 }
  0x9e   : > { %1186 = vmatprep.subr.bf16.mxu1 %v1259_v56 }
  0xa1   : > { %1187 = vmatpush3.bf16.msra.mxu1 %v1259_v56 }
  0xe4   : > { %v291_v7 = vpop.f32.mrb[0].mxu0 }
  0xe5   : > { %v292_v8 = vadd.f32 %v1046_v6, %v291_v7  ;;  %v1140_v9 = vpop.f32.mrb[1].mxu0 }
  0xe6   : > { %v294_v10 = vpop.f32.mrb[2].mxu0  ;;  %v1291_v9 = vmov 0.2  }
  0xe7   : > { %v300_v11 = vmul.f32 0.2, %v292_v8  ;;  %v295_v12 = vadd.f32 %v1046_v6, %v294_v10  ;;  %v1141_v13 = vpop.f32.mrb[3].mxu0  ;;  %vm298_vm3 = vcmp.ge.f32.partialorder %v292_v8, 0.0 }
  0xe9   : > { %vm299_vm4 = vcmp.ge.f32.partialorder %v295_v12, 0.0  ;;  %v301_v14 = vmul.f32 0.2, %v295_v12  ;;  %v302_v15 = vsel %vm298_vm3, %v292_v8, %v300_v11  ;;  %v1063_v8 = vld [vmem:[%s1498_s4 + $0x6] ss:$0 sm:$0xff] }
  0xeb   : > { %v303_v16 = vsel %vm299_vm4, %v295_v12, %v301_v14 }
  0xec   : > { %v308_v17 = vpack.c.bf16 %v303_v16, %v302_v15 }
  0xee   : > { %1147 = vmatmul.mubr.msk.bf16.vlgmr.msra.gmra.mrb[4].mxu0 %vm325_vm5, %v308_v17 }
  0xef   : > { %1154 = vmatprep.mubr.msk.bf16.mxu0 %vm1289_vm1, %v1288_v1  ;;  %1151 = vmatpush3.bf16.msra.mxu0 %v1247_v18 }
  0xf0   : > { %1152 = vmatprep.subr.bf16.mxu0 %v1288_v1 }
  0xf3   : > { %1153 = vmatpush3.bf16.msra.mxu0 %v1248_v19  ;;  %v1265_v19 = vld [vmem:[%s1496_s2 + $0x80] sm:$0xff]  }
  0xf4   : > { %1164 = vmatprep.subr.bf16.mxu0 %v1288_v1 }
 0x157   : > { %v497_v50 = vpop.f32.mrb[0].mxu1 }
 0x158   : > { %v1162_v51 = vpop.f32.mrb[1].mxu1 }
 0x159   : > { %v500_v52 = vpop.f32.mrb[2].mxu1 }
 0x15a   : > { %v1163_v54 = vpop.f32.mrb[3].mxu1 }
 0x1c1   : > { %v363_v21 = vpop.f32.mrb[4].mxu0 }
 0x1c2   : > { %v364_v22 = vadd.f32 %v1049_v20, %v363_v21  ;;  %v1148_v23 = vpop.f32.mrb[5].mxu0  ;;  %v1267_v21 = vld [vmem:[%s1496_s2 + $0x90] sm:$0xff]  }
 0x1c3   : > { %v366_v24 = vpop.f32.mrb[6].mxu0  ;;  %v1269_v23 = vld [vmem:[%s1497_s3 + $0x8] sm:$0xff]  }
 0x1c4   : > { %v372_v25 = vmul.f32 0.2, %v364_v22  ;;  %v367_v26 = vadd.f32 %v1049_v20, %v366_v24  ;;  %v1149_v27 = vpop.f32.mrb[7].mxu0  ;;  %vm370_vm6 = vcmp.ge.f32.partialorder %v364_v22, 0.0  ;;  %v1266_v20 = vld [vmem:[%s1496_s2 + $0x88] sm:$0xff]   ;;  %v1270_v24 = vld [vmem:[%s1497_s3 + $0x10] sm:$0xff]  }
 0x1c5   : > { %v1072_v27 = vld [vmem:[%s1498_s4 + $0x4] ss:$0 sm:$0xff] }
 0x1c6   : > { %vm371_vm7 = vcmp.ge.f32.partialorder %v367_v26, 0.0  ;;  %v373_v28 = vmul.f32 0.2, %v367_v26  ;;  %v374_v29 = vsel %vm370_vm6, %v364_v22, %v372_v25  ;;  %v1268_v22 = vld [vmem:[%s1497_s3] sm:$0xff]   ;;  %v1271_v25 = vld [vmem:[%s1497_s3 + $0x18] sm:$0xff]  }
 0x1c7   : > { %1212 = vmatprep.subr.bf16.mxu1 %v1268_v22 }
 0x1c8   : > { %v375_v30 = vsel %vm371_vm7, %v367_v26, %v373_v28  ;;  %v1272_v26 = vld [vmem:[%s1497_s3 + $0x20] sm:$0xff]  }
 0x1c9   : > { %v380_v32 = vpack.c.bf16 %v375_v30, %v374_v29 }
 0x1cb   : > { %1155 = vmatmul.mubr.msk.bf16.vlgmr.msra.gmra.mrb[8].mxu0 %vm325_vm5, %v380_v32 }
 0x1cc   : > { %1165 = vmatpush3.bf16.msra.mxu0 %v1249_v31  ;;  %1168 = vmatprep.mubr.msk.bf16.mxu0 %vm1289_vm1, %v1288_v1  ;;  %vm978_vm1 = vcmask 39936  }
 0x1cd   : > { %1166 = vmatprep.subr.bf16.mxu0 %v1288_v1 }
 0x1d0   : > { %1167 = vmatpush3.bf16.msra.mxu0 %v1251_v35 }
 0x1d1   : > { %1192 = vmatprep.subr.bf16.mxu0 %v1260_v57 }
 0x29e   : > { %v434_v43 = vpop.f32.mrb[8].mxu0 }
 0x29f   : > { %v1156_v44 = vpop.f32.mrb[9].mxu0  ;;  %v435_v46 = vadd.f32 %v1053_v42, %v434_v43 }
 0x2a0   : > { %v437_v45 = vpop.f32.mrb[10].mxu0  ;;  %v1273_v44 = vld [vmem:[%s1497_s3 + $0x28] sm:$0xff]  }
 0x2a1   : > { %v438_v47 = vadd.f32 %v1053_v42, %v437_v45  ;;  %v1157_v48 = vpop.f32.mrb[11].mxu0  ;;  %v1274_v45 = vld [vmem:[%s1497_s3 + $0x30] sm:$0xff]  }
 0x2a3   : > { %v445_v49 = vpack.c.bf16 %v438_v47, %v435_v46  ;;  %v1275_v46 = vld [vmem:[%s1497_s3 + $0x38] sm:$0xff]   ;;  %v1081_v47 = vld [vmem:[%s1498_s4 + $0x5] ss:$0 sm:$0xff] }
 0x2a5   : > { %1169 = vmatmul.mubr.msk.bf16.vlgmr.msra.gmra.mrb[12].mxu0 %vm325_vm5, %v445_v49 }
 0x2a6   : > { %1193 = vmatpush3.bf16.msra.mxu0 %v1260_v57 }
 0x2a7   : > { %1194 = vmatprep.subr.bf16.mxu0 %v1261_v58 }
 0x2aa   : > { %1195 = vmatpush3.bf16.msra.mxu0 %v1261_v58 }
 0x2ab   : > { %1196 = vmatprep.subr.bf16.mxu0 %v1262_v59 }
 0x2ae   : > { %1197 = vmatpush3.bf16.msra.mxu0 %v1262_v59 }
 0x2af   : > { %1198 = vmatprep.subr.bf16.mxu0 %v1263_v60 }
 0x2b2   : > { %1199 = vmatpush3.bf16.msra.mxu0 %v1263_v60 }
 0x2b3   : > { %1200 = vmatprep.subr.bf16.mxu0 %v1264_v61 }
 0x2b6   : > { %1201 = vmatpush3.bf16.msra.mxu0 %v1264_v61 }
 0x2b7   : > { %1202 = vmatprep.subr.bf16.mxu0 %v1265_v19 }
 0x2ba   : > { %1203 = vmatpush3.bf16.msra.mxu0 %v1265_v19 }
 0x2bb   : > { %1204 = vmatprep.subr.bf16.mxu0 %v1266_v20 }
 0x2be   : > { %1205 = vmatpush3.bf16.msra.mxu0 %v1266_v20 }
 0x2bf   : > { %1206 = vmatprep.subr.bf16.mxu0 %v1267_v21 }
 0x2c2   : > { %1207 = vmatpush3.bf16.msra.mxu0 %v1267_v21 }
 0x378   : > { %v553_v63 = vpop.f32.mrb[12].mxu0 }
 0x379   : > { %v554_v0 = vadd.f32 %v553_v63, %v497_v50  ;;  %v1170_v1 = vpop.f32.mrb[13].mxu0 }
 0x37a   : > { %v556_v2 = vpop.f32.mrb[14].mxu0 }
 0x37b   : > { %v564_v3 = vadd.f32 %v1062_v62, %v554_v0  ;;  %v557_v4 = vadd.f32 %v556_v2, %v500_v52  ;;  %v1171_v5 = vpop.f32.mrb[15].mxu0 }
 0x37d   : > { %vm566_vm10 = vcmp.ge.f32.partialorder %v564_v3, 0.0  ;;  %v568_v6 = vmul.f32 0.2, %v564_v3  ;;  %v565_v7 = vadd.f32 %v1062_v62, %v557_v4 }
 0x37e   : > { %v572_v10 = vsel %vm566_vm10, 1.0, %v1291_v9 }
 0x37f   : > { %vm567_vm11 = vcmp.ge.f32.partialorder %v565_v7, 0.0  ;;  %v569_v11 = vmul.f32 0.2, %v565_v7  ;;  %v578_v13 = vmul.f32 %v1063_v8, %v572_v10  ;;  %v570_v15 = vsel %vm566_vm10, %v564_v3, %v568_v6 }
 0x380   : > { %v573_v12 = vsel %vm567_vm11, 1.0, %v1291_v9 }
 0x381   : > { %v579_v14 = vmul.f32 %v1063_v8, %v573_v12  ;;  %v571_v16 = vsel %vm567_vm11, %v565_v7, %v569_v11  ;;  %v1090_v12 = vld [vmem:[%s1498_s4 + $0x7] ss:$0 sm:$0xff] }
 0x382   : > { %v596_v17 = vpack.c.bf16 %v571_v16, %v570_v15 }
 0x383   : > { %v597_v18 = vpack.c.bf16 %v579_v14, %v578_v13 }
 0x384   : > { %1188 = vmatprep.mubr.bf16.mxu1 %v596_v17 }
 0x385   : > { %1189 = vmatmul.mubr.bf16.vlgmr.msra.gmra.mrb[4].mxu1 %v597_v18 }
 0x386   : > { %1213 = vmatpush3.bf16.msra.mxu1 %v1268_v22 }
 0x387   : > { %1214 = vmatprep.subr.bf16.mxu1 %v1269_v23 }
 0x38a   : > { %1215 = vmatpush3.bf16.msra.mxu1 %v1269_v23 }
 0x38b   : > { %1216 = vmatprep.subr.bf16.mxu1 %v1270_v24 }
 0x38e   : > { %1217 = vmatpush3.bf16.msra.mxu1 %v1270_v24 }
 0x38f   : > { %1218 = vmatprep.subr.bf16.mxu1 %v1271_v25 }
 0x392   : > { %1219 = vmatpush3.bf16.msra.mxu1 %v1271_v25 }
 0x393   : > { %1220 = vmatprep.subr.bf16.mxu1 %v1272_v26 }
 0x396   : > { %1221 = vmatpush3.bf16.msra.mxu1 %v1272_v26 }
 0x397   : > { %1222 = vmatprep.subr.bf16.mxu1 %v1273_v44 }
 0x39a   : > { %1223 = vmatpush3.bf16.msra.mxu1 %v1273_v44 }
 0x39b   : > { %1224 = vmatprep.subr.bf16.mxu1 %v1274_v45 }
 0x39e   : > { %1225 = vmatpush3.bf16.msra.mxu1 %v1274_v45 }
 0x39f   : > { %1226 = vmatprep.subr.bf16.mxu1 %v1275_v46 }
 0x3a2   : > { %1227 = vmatpush3.bf16.msra.mxu1 %v1275_v46 }
 0x458   : > { %v1190_v28 = vpop.f32.mrb[4].mxu1 }
 0x459   : > { %v680_v29 = vpop.f32.mrb[5].mxu1 }
 0x45a   : > { %v699_v30 = vadd.f32 %v1072_v27, %v680_v29  ;;  %v1191_v31 = vpop.f32.mrb[6].mxu1 }
 0x45b   : > { %v683_v32 = vpop.f32.mrb[7].mxu1 }
 0x45c   : > { %vm701_vm12 = vcmp.ge.f32.partialorder %v699_v30, 0.0  ;;  %v703_v33 = vmul.f32 0.2, %v699_v30  ;;  %v700_v34 = vadd.f32 %v1072_v27, %v683_v32 }
 0x45d   : > { %v707_v35 = vsel %vm701_vm12, 1.0, %v1291_v9 }
 0x45e   : > { %v709_v36 = vmul.f32 %v1190_v28, %v707_v35  ;;  %vm702_vm13 = vcmp.ge.f32.partialorder %v700_v34, 0.0  ;;  %v704_v37 = vmul.f32 0.2, %v700_v34  ;;  %v705_v40 = vsel %vm701_vm12, %v699_v30, %v703_v33 }
 0x45f   : > { %v708_v38 = vsel %vm702_vm13, 1.0, %v1291_v9 }
 0x460   : > { %v710_v39 = vmul.f32 %v1191_v31, %v708_v38  ;;  %v706_v41 = vsel %vm702_vm13, %v700_v34, %v704_v37 }
 0x461   : > { %v727_v42 = vpack.c.bf16 %v706_v41, %v705_v40 }
 0x462   : > { %v728_v43 = vpack.c.bf16 %v710_v39, %v709_v36 }
 0x463   : > { %1208 = vmatprep.mubr.bf16.mxu0 %v727_v42 }
 0x464   : > { %1209 = vmatmul.mubr.bf16.vlgmr.msra.gmra.mrb[16].mxu0 %v728_v43 }
 0x537   : > { %v1210_v48 = vpop.f32.mrb[16].mxu0 }
 0x538   : > { %v811_v49 = vpop.f32.mrb[17].mxu0 }
 0x539   : > { %v830_v50 = vadd.f32 %v1081_v47, %v811_v49  ;;  %v1211_v51 = vpop.f32.mrb[18].mxu0 }
 0x53a   : > { %v814_v52 = vpop.f32.mrb[19].mxu0 }
 0x53b   : > { %vm832_vm14 = vcmp.ge.f32.partialorder %v830_v50, 0.0  ;;  %v834_v53 = vmul.f32 0.2, %v830_v50  ;;  %v831_v54 = vadd.f32 %v1081_v47, %v814_v52 }
 0x53c   : > { %v838_v55 = vsel %vm832_vm14, 1.0, %v1291_v9 }
 0x53d   : > { %v840_v56 = vmul.f32 %v1210_v48, %v838_v55  ;;  %vm833_vm15 = vcmp.ge.f32.partialorder %v831_v54, 0.0  ;;  %v835_v57 = vmul.f32 0.2, %v831_v54  ;;  %v836_v60 = vsel %vm832_vm14, %v830_v50, %v834_v53 }
 0x53e   : > { %v839_v58 = vsel %vm833_vm15, 1.0, %v1291_v9 }
 0x53f   : > { %v841_v59 = vmul.f32 %v1211_v51, %v839_v58  ;;  %v837_v61 = vsel %vm833_vm15, %v831_v54, %v835_v57 }
 0x540   : > { %v858_v62 = vpack.c.bf16 %v837_v61, %v836_v60 }
 0x541   : > { %v859_v63 = vpack.c.bf16 %v841_v59, %v840_v56 }
 0x542   : > { %1228 = vmatprep.mubr.bf16.mxu1 %v858_v62 }
 0x543   : > { %1229 = vmatmul.mubr.bf16.vlgmr.msra.gmra.mrb[8].mxu1 %v859_v63 }
 0x616   : > { %v1230_v0 = vpop.f32.mrb[8].mxu1 }
 0x617   : > { %v963_v1 = vand.u32 2147483647, %v1230_v0  ;;  %v942_v2 = vpop.f32.mrb[9].mxu1 }
 0x618   : > { %v1231_v3 = vpop.f32.mrb[10].mxu1  ;;  %v961_v13 = vadd.f32 %v1090_v12, %v942_v2 }
 0x619   : > { %1276 = vlog2.f32 %v963_v1  ;;  %v964_v4 = vand.u32 2147483647, %v1231_v3  ;;  %v945_v5 = vpop.f32.mrb[11].mxu1 }
 0x61a   : > { %v962_v15 = vadd.f32 %v1090_v12, %v945_v5 }
 0x61b   : > { %1278 = vlog2.f32 %v964_v4 }
 0x623   : > { %v1277_v6 = vpop.eup %1276 }
 0x624   : > { %v966_v7 = vmul.f32 0.6931472, %v1277_v6 }
 0x625   : > { %v1279_v8 = vpop.eup %1278 }
 0x626   : > { %v970_v9 = vsel %vm969_vm0, %v966_v7, 0.0  ;;  %v968_v10 = vmul.f32 0.6931472, %v1279_v8 }
 0x627   : > { %971 = vadd.xlane.f32.xlu0 %v970_v9 }
 0x628   : > { %v973_v11 = vsel %vm969_vm0, %v968_v10, 0.0 }
 0x629   : > { %974 = vadd.xlane.f32.xlu1 %v973_v11 }
 0x6b4   : > { %v972_v14 = vpop.xlane.xlu0 %971 }
 0x6b5   : > { %v976_v16 = vsel %vm969_vm0, %v961_v13, %v972_v14 }
 0x6b6   : > { %979 = vst.msk [vmem:[%s226_s15] sm:$0xff] %vm978_vm1, %v976_v16  ;;  %v975_v17 = vpop.xlane.xlu1 %974 }
 0x6b7   : > { %v977_v18 = vsel %vm969_vm0, %v962_v15, %v975_v17 }
 0x6b8   : > { %980 = vst.msk [vmem:[%s226_s15 + $0x8] sm:$0xff] %vm978_vm1, %v977_v18 }
 0x6b9 PF: > { %s15_s18 = sadd.s32 1, %s1286_s18  }
 0x6ba   : > { %p12_p4 = scmp.ge.s32.totalorder %s15_s18, 4  }
 0x6bc   :  { %14 = sbr.rel (!%p12_p4) target bundleno = 1 (0x1), region = 70 }

</bundles_post_ra>
